<compile_context>
chip_gen: v6e
topology: v6e:2x2x1
jax: 0.10.0
libtpu: 0.0.40
codegen_flags: <defaults>
</compile_context>

<pallas_src>
import functools

import jax
import jax.numpy as jnp
from jax import lax
from jax.experimental import pallas as pl
from jax.experimental.pallas import tpu as pltpu

# Problem sizes (channel counts fixed by the module; batch/spatial kept small).
N, CIN, H, W = 2, 256, 16, 16
CMID, COUT = 64, 2
HW = H * W
NHW = N * HW                  # merged lane width (both samples)
NTAP = 9                      # 3x3 taps
EPS = 1e-5                    # nn.BatchNorm2d default
DROP_P = 0.3


# ----------------------------------------------------------------------------
# pltpu.roll convention check (cached + lazily evaluated).
# The fused kernel realizes the 3x3 spatial taps as static lane rotations of
# the per-tap matmul products; the rotation direction of Mosaic's rotate op is
# established once so the in-kernel shift constants stay correct across
# jaxlib versions.  Runs on the default backend (same as the fused kernel).
# ----------------------------------------------------------------------------
def _roll_probe_kernel(x_ref, o_ref):
    o_ref[...] = pltpu.roll(x_ref[...], 1, 1)


@functools.lru_cache(maxsize=None)
def _roll_matches_jnp() -> bool:
    x = jnp.tile(lax.iota(jnp.float32, 128)[None, :], (8, 1))
    out = pl.pallas_call(
        _roll_probe_kernel,
        out_shape=jax.ShapeDtypeStruct((8, 128), jnp.float32),
    )(x)
    # jnp.roll convention: out[:, 1] == x[:, 0] == 0.
    return bool(jax.device_get(out)[0, 1] == 0.0)


def _conv_taps():
    """Per 3x3 tap: (w1 tap index, lane-roll shift, dh, dw), center tap first.

    The tap's contribution at merged flattened position q is product[:, q + d]
    with d = dh*W + dw, i.e. a rotation of the product by -d in jnp.roll
    convention (sign flipped if pltpu.roll rotates the other way).
    """
    sign = -1 if _roll_matches_jnp() else 1
    taps = []
    for kh in range(3):
        for kw in range(3):
            dh, dw = kh - 1, kw - 1
            d = dh * W + dw
            taps.append((kh * 3 + kw, (sign * d) % NHW, dh, dw))
    center = [t for t in taps if t[2] == 0 and t[3] == 0]
    border = [t for t in taps if t[2] != 0 or t[3] != 0]
    return tuple(center + border)


# ----------------------------------------------------------------------------
# Fused kernel body.
#   x_ref    : (CIN, N*HW)        channel-major, samples merged along lanes
#   w1_ref   : (9, CMID, CIN)     conv1 weight, tap-major
#   b1_ref   : (CMID, 1)
#   drop_ref : (N, CMID, 1)       pre-scaled dropout2d channel mask
#   gamma/beta: (CMID, 1)         BN affine
#   w2_ref   : (COUT, CMID)       1x1 conv weight
#   b2_ref   : (COUT, 1)
#   o_ref    : (COUT, N*HW)       lane-dense channel-major output
#   xb_ref   : VMEM (CIN, N*HW) bf16   bf16 copy of x streamed by all dots
# ----------------------------------------------------------------------------
def _classifier_kernel(x_ref, w1_ref, b1_ref, drop_ref, gamma_ref, beta_ref,
                       w2_ref, b2_ref, o_ref, xb_ref, *, taps):
    f32, bf16 = jnp.float32, jnp.bfloat16

    # bf16 copy of the input: single cast pass; every per-tap dot streams its
    # RHS from this VMEM scratch (half the f32 load bandwidth).
    xb_ref[...] = x_ref[...].astype(bf16)

    # Per-sample flattened spatial coordinates along the merged lane axis.
    lane = lax.broadcasted_iota(jnp.int32, (1, NHW), 1)
    pos = lane % HW
    hpos = pos // W
    wpos = pos % W

    # --- conv1 (3x3, pad=1): 9 per-tap bf16 MXU dots, results rolled/masked/
    # accumulated as live values (no product scratch round trip).
    # Center tap first: seeds the accumulator together with the bias (no
    # separate bias pass) and needs no border mask / roll.
    t0 = taps[0][0]
    acc = (jnp.dot(w1_ref[t0].astype(bf16), xb_ref[...],
                   preferred_element_type=f32)
           + b1_ref[...])                                        # (CMID, NHW)

    for t, shift, dh, dw in taps[1:]:
        prod = jnp.dot(w1_ref[t].astype(bf16), xb_ref[...],
                       preferred_element_type=f32)               # (CMID, NHW)
        if shift:
            prod = pltpu.roll(prod, shift, 1)                    # XLU lane roll
        # Source-position validity (h+dh, w+dw) per sample; this also zeroes
        # the circular-roll wrap across the sample boundary / array ends.
        conds = []
        if dh == -1:
            conds.append(hpos >= 1)
        elif dh == 1:
            conds.append(hpos <= H - 2)
        if dw == -1:
            conds.append(wpos >= 1)
        elif dw == 1:
            conds.append(wpos <= W - 2)
        m = conds[0]
        for c in conds[1:]:
            m = m & c
        acc = acc + prod * m.astype(f32)                         # (1,NHW) bcast

    # --- dropout2d: per (sample, channel) scale built from the lane index.
    s1 = (lane >= HW).astype(f32)                                # (1, NHW)
    dmul = drop_ref[0] * (1.0 - s1) + drop_ref[1] * s1           # (CMID, NHW)
    y = acc * dmul

    # --- BatchNorm2d: training-mode batch stats (two-pass centered variance)
    # computed from the live y value -- no VMEM re-read of y.
    inv_cnt = 1.0 / float(NHW)
    mean = jnp.sum(y, axis=1, keepdims=True) * inv_cnt           # (CMID, 1)
    d = y - mean
    var = jnp.sum(d * d, axis=1, keepdims=True) * inv_cnt
    scale = gamma_ref[...] * lax.rsqrt(var + EPS)                # (CMID, 1)
    shift_ = beta_ref[...] - mean * scale

    # --- BN apply + ReLU + 1x1 conv (lane-dense (COUT, N*HW) output).
    z = jnp.maximum(y * scale + shift_, 0.0)                     # (CMID, NHW)
    o_ref[...] = (jnp.dot(w2_ref[...].astype(bf16), z.astype(bf16),
                          preferred_element_type=f32)
                  + b2_ref[...])


def _build_pallas_fn(taps):
    def full(*shape):
        return pl.BlockSpec(shape, lambda i: (0,) * len(shape))

    kernel = functools.partial(_classifier_kernel, taps=taps)
    return pl.pallas_call(
        kernel,
        out_shape=jax.ShapeDtypeStruct((COUT, NHW), jnp.float32),
        grid_spec=pltpu.PrefetchScalarGridSpec(
            num_scalar_prefetch=0,
            grid=(1,),
            in_specs=[
                full(CIN, NHW),            # x, channel-major merged samples
                full(NTAP, CMID, CIN),     # conv1 weight, tap-major
                full(CMID, 1),             # conv1 bias
                full(N, CMID, 1),          # dropout2d channel mask (scaled)
                full(CMID, 1),             # bn gamma
                full(CMID, 1),             # bn beta
                full(COUT, CMID),          # conv2 weight
                full(COUT, 1),             # conv2 bias
            ],
            out_specs=full(COUT, NHW),
            scratch_shapes=[
                pltpu.VMEM((CIN, NHW), jnp.bfloat16),   # bf16 copy of x
            ],
        ),
        compiler_params=pltpu.CompilerParams(
            dimension_semantics=("arbitrary",)),
    )


# ----------------------------------------------------------------------------
# Wrapper: NCHW in -> NCHW out.  The only XLA-side work is the one-off
# channel-major relayout of x (ideally the producing layer would already emit
# activations in (CIN, N*HW)) and a tiny reshape/transpose of the 2-channel
# output.
# ----------------------------------------------------------------------------
def make_classifier_forward():
    pallas_fn = _build_pallas_fn(_conv_taps())

    @functools.partial(jax.jit, static_argnames=("dropout",))
    def classifier_forward(x_nchw, params, drop_mask, dropout=True):
        x_cm = jnp.transpose(x_nchw.reshape(N, CIN, HW),
                             (1, 0, 2)).reshape(CIN, NHW)
        mask = drop_mask if dropout else jnp.ones((N, CMID, 1), jnp.float32)
        out = pallas_fn(x_cm, params["w1"], params["b1"], mask,
                        params["gamma"], params["beta"],
                        params["w2"], params["b2"])
        # (COUT, N*HW) -> (N, COUT, H, W)
        return jnp.transpose(out.reshape(COUT, N, H, W), (1, 0, 2, 3))

    return classifier_forward


# ----------------------------------------------------------------------------
# Deterministic parameter init (matches the module's shapes / init schemes).
# ----------------------------------------------------------------------------
def init_params(key):
    k1, k2, k3, k4 = jax.random.split(key, 4)
    # conv1: xavier_normal_ over (64, 256, 3, 3); stored tap-major (9, 64, 256)
    # so each tap is a direct (CMID, CIN) MXU LHS.
    fan_in1, fan_out1 = CIN * 9, CMID * 9
    std1 = (2.0 / (fan_in1 + fan_out1)) ** 0.5
    w1_pt = std1 * jax.random.normal(k1, (CMID, CIN, 3, 3), jnp.float32)
    w1 = jnp.transpose(w1_pt, (2, 3, 0, 1)).reshape(NTAP, CMID, CIN)
    b1 = jax.random.uniform(k2, (CMID, 1), jnp.float32,
                            -1.0 / fan_in1 ** 0.5, 1.0 / fan_in1 ** 0.5)
    # conv2: xavier_normal_ over (2, 64, 1, 1).
    std2 = (2.0 / (CMID + COUT)) ** 0.5
    w2 = std2 * jax.random.normal(k3, (COUT, CMID), jnp.float32)
    b2 = jax.random.uniform(k4, (COUT, 1), jnp.float32,
                            -1.0 / CMID ** 0.5, 1.0 / CMID ** 0.5)
    gamma = jnp.ones((CMID, 1), jnp.float32)   # nn.init.constant_(bn1.weight, 1)
    beta = jnp.zeros((CMID, 1), jnp.float32)   # nn.init.constant_(bn1.bias, 0)
    return dict(w1=w1, b1=b1, gamma=gamma, beta=beta, w2=w2, b2=b2)


@jax.jit
def reference_forward(x_nchw, params, drop_mask):
    """Plain-JAX/XLA reference for numerical verification."""
    x = jnp.transpose(x_nchw, (0, 2, 3, 1))                            # NHWC
    w_hwio = jnp.transpose(params["w1"].reshape(3, 3, CMID, CIN), (0, 1, 3, 2))
    y1 = lax.conv_general_dilated(
        x, w_hwio, (1, 1), "SAME",
        dimension_numbers=("NHWC", "HWIO", "NHWC")) + params["b1"][:, 0]
    y1 = y1 * drop_mask[:, :, 0][:, None, None, :]                     # dropout2d
    mean = y1.mean(axis=(0, 1, 2))
    var = ((y1 - mean) ** 2).mean(axis=(0, 1, 2))
    z = jnp.maximum((y1 - mean) / jnp.sqrt(var + EPS) * params["gamma"][:, 0]
                    + params["beta"][:, 0], 0.0)
    out = jnp.einsum("nhwc,oc->nhwo", z, params["w2"]) + params["b2"][:, 0]
    return jnp.transpose(out, (0, 3, 1, 2))


if __name__ == "__main__":
    key = jax.random.PRNGKey(0)
    kp, kx, kd = jax.random.split(key, 3)
    params = init_params(kp)
    x = jax.random.normal(kx, (N, CIN, H, W), jnp.float32)

    # dropout2d mask: zero whole channels per sample, scaled by 1/(1-p).
    # TODO(synk): F.dropout2d's internal torch RNG has no Pallas equivalent;
    # the scaled channel mask is generated host-side and passed in.
    keep = jax.random.bernoulli(kd, 1.0 - DROP_P, (N, CMID, 1))
    drop_mask = keep.astype(jnp.float32) / (1.0 - DROP_P)

    forward = make_classifier_forward()

    out = jax.block_until_ready(forward(x, params, drop_mask, dropout=True))
    assert out.shape == (N, COUT, H, W), out.shape

    ref = jax.block_until_ready(reference_forward(x, params, drop_mask))
    err = float(jnp.max(jnp.abs(out - ref)))
    # bf16 MXU operands (f32 accumulation): tolerance widened accordingly; a
    # wrong tap shift / border mask would show up as an O(1) error.
    assert err < 3e-2, err

    # dropout=False path as well (module's `dropout` flag).
    out_nd = jax.block_until_ready(
        forward(x, params, drop_mask, dropout=False))
    assert out_nd.shape == (N, COUT, H, W)

    print("KERNEL_OK")
</pallas_src>

<mosaic_0001>
module attributes {stable_mosaic.version = 11 : i64} {
  func.func @_roll_probe_kernel(%arg0: memref<8x128xf32, #tpu.memory_space<vmem>>, %arg1: memref<8x128xf32, #tpu.memory_space<vmem>>) attributes {dimension_semantics = [], scalar_prefetch = 0 : i64, scratch_operands = 0 : i64, tpu.core_type = #tpu.core_type<tc>} {
    %c0 = arith.constant 0 : index
    %c0_0 = arith.constant 0 : index
    %0 = vector.load %arg0[%c0, %c0_0] : memref<8x128xf32, #tpu.memory_space<vmem>>, vector<8x128xf32>
    %c1_i32 = arith.constant 1 : i32
    %1 = tpu.dynamic_rotate %0 by %c1_i32 dim 1 : vector<8x128xf32>, i32 -> vector<8x128xf32>
    %c0_1 = arith.constant 0 : index
    %c0_2 = arith.constant 0 : index
    %2 = vector.load %arg1[%c0_1, %c0_2] : memref<8x128xf32, #tpu.memory_space<vmem>>, vector<8x128xf32>
    tpu.vector_store %arg1[%c0_1, %c0_2], %1 {strides = array<i32>} : memref<8x128xf32, #tpu.memory_space<vmem>>, vector<8x128xf32>,
    return
  }
}

</mosaic_0001>

<bundles_post_ra>
// kernel: tpu_custom_call.1
= control target key start
LH: loop header
LB: loop body
LE: loop exit
PB: predicated region body
PF: predicated region fallthrough
CT: control target
= control target key end

     0   :  { %6 = vsyncpa [#allocation3], 0  ;;  %s106_s0 = inlined_call_operand.hbm [shape: f32[8,128], index: 0, kind: input, shape index: {}]   ;;  %s107_s1 = inlined_call_operand.hbm [shape: f32[8,128], index: 1, kind: output, shape index: {}]  }
   0x1   :  { %7 = vsyncpa [#allocation4], 0  ;;  %s87_s6 = smov [#allocation2]  }
   0x2   :  { %s14_s7 = sshll.u32 %s87_s6, 4  ;;  %s15_s7 = int_to_ptr.vmem [resolvable:$true] %s14_s7 }
   0x3   :  { %s51_s8 = scalar_lea.vmem %s15_s7, 128  ;;  %p56_p1 = scmp.lt.s32.totalorder %s15_s7, %s15_s7 }
   0x4   :  { %p52_p0 = scmp.ne.s32.totalorder %s15_s7, %s51_s8  ;;  %p57_p2 = scmp.lt.s32.totalorder %s51_s8, %s51_s8 }
   0x6   :  { %p58_p3 = por %p57_p2, %p56_p1 }
   0x8   :  { %p59_p4 = pnand %p58_p3, %p52_p0 }
   0xa   :  { %62 = shalt.err (!%p59_p4)
}
   0xb   :  { %17 = dma.hbm_to_vmem [thread:$0]  %s106_s0, 128, %s15_s7, [#allocation3]  }
   0xc   :  { %83 = dma.done.wait [#allocation3], 128  }
   0xd   :  { %84 = vsyncadd [#allocation3], 4294967168  ;;  %v21_v0 = vld [vmem:[#allocation2] sm:$0xff]  ;;  %s88_s11 = smov 1   ;;  %s89_s12 = smov [#allocation5]  }
   0xe   :  { %22 = vrot.lane.b32.xlu0 %v21_v0, %s88_s11  ;;  %s31_s13 = sshll.u32 %s89_s12, 4  ;;  %s32_s13 = int_to_ptr.vmem [resolvable:$true] %s31_s13 }
   0xf   :  { %s63_s14 = scalar_lea.vmem %s32_s13, 128  ;;  %p68_p6 = scmp.lt.s32.totalorder %s32_s13, %s32_s13 }
  0x10   :  { %p64_p5 = scmp.ne.s32.totalorder %s32_s13, %s63_s14  ;;  %p69_p7 = scmp.lt.s32.totalorder %s63_s14, %s63_s14 }
  0x12   :  { %p70_p8 = por %p69_p7, %p68_p6 }
  0x14   :  { %p71_p9 = pnand %p70_p8, %p64_p5 }
  0x80   :  { %v23_v1 = vpop.permute.xlu0 %22 }
  0x81   :  { %24 = vst [vmem:[#allocation5] sm:$0xff] %v23_v1 }
  0x82   :  { %74 = shalt.err (!%p71_p9)
}
  0x83   :  { %34 = dma.vmem_to_hbm [thread:$0]  %s32_s13, 128, %s107_s1, [#allocation4]  }
  0x84   :  { %85 = dma.done.wait [#allocation4], 128  }
  0x85   :  { %86 = vsyncadd [#allocation4], 4294967168 }
  0x86   :  { %38 = vsyncpa [#allocation3], 1 }
  0x87   :  { %39 = vsyncpa [#allocation4], 1 }

</bundles_post_ra>
